<compile_context>
chip_gen: v7x
topology: tpu7x:2x2x1
jax: 0.10.0
libtpu: 0.0.40
codegen_flags: <defaults>
</compile_context>

<pallas_src>
import jax
import jax.numpy as jnp
from jax.experimental import pallas as pl
from jax.experimental.pallas import tpu as pltpu

# ---- hyperparameters (small shapes consistent with the module) ----
B = 2                       # batch
T = 16                      # sequence length
D_IN = 8                    # d_in
D_HID = 32                  # d_hid
K0, K1 = 3, 3               # fft_conv1d_kernel_size (odd -> 'same' padding)
PAD0 = (K0 - 1) // 2
PAD1 = (K1 - 1) // 2
LN_EPS = 1e-5               # nn.LayerNorm default eps


# --------------------------------------------------------------------------
# Pallas kernel: full PositionwiseFeedForward forward (non-causal branch)
# --------------------------------------------------------------------------
def _ffn_kernel(x_ref, w1_ref, w2_ref, pv_ref, out_ref):
    x = x_ref[...]                                    # (B*T, D_IN) f32
    pv = pv_ref[...]                                  # (4, D_HID) packed params
    b1 = pv[0:1, :]                                   # (1, D_HID)
    b2 = pv[1:2, :D_IN]                               # (1, D_IN)
    gamma = pv[2:3, :D_IN]                            # (1, D_IN)
    beta = pv[3:4, :D_IN]                             # (1, D_IN)

    # Per-row token index; masks for the 'same'-padding boundary rows.  Rows
    # are (b, t) flattened, so masking t==0 / t==T-1 also prevents the roll
    # from leaking data across batch elements.
    t_idx = jax.lax.broadcasted_iota(jnp.int32, (B * T, 1), 0) % T
    first = t_idx == 0
    last = t_idx == T - 1

    # ---- w_1: Conv1d(d_in -> d_hid, k=K0, 'same') as ONE im2col matmul ----
    x_prev = jnp.where(first, 0.0, pltpu.roll(x, shift=1, axis=0))          # x[t-1]
    x_next = jnp.where(last, 0.0, pltpu.roll(x, shift=B * T - 1, axis=0))   # x[t+1]
    xcat = jnp.concatenate([x_prev, x, x_next], axis=1)                     # (B*T, K0*D_IN)
    h = jnp.dot(xcat, w1_ref[...], preferred_element_type=jnp.float32)
    h = jnp.maximum(h + b1, 0.0)                                            # bias + ReLU

    # ---- w_2: Conv1d(d_hid -> d_in, k=K1, 'same') as ONE im2col matmul ----
    h_prev = jnp.where(first, 0.0, pltpu.roll(h, shift=1, axis=0))
    h_next = jnp.where(last, 0.0, pltpu.roll(h, shift=B * T - 1, axis=0))
    hcat = jnp.concatenate([h_prev, h, h_next], axis=1)                     # (B*T, K1*D_HID)
    y = jnp.dot(hcat, w2_ref[...], preferred_element_type=jnp.float32) + b2

    # dropout (p=0.1) is identity at inference; residual add + LayerNorm.
    z = y + x
    mu = jnp.mean(z, axis=-1, keepdims=True)
    var = jnp.mean(jnp.square(z - mu), axis=-1, keepdims=True)
    out_ref[...] = (z - mu) * jax.lax.rsqrt(var + LN_EPS) * gamma + beta


def positionwise_ffn_pallas(x, p):
    """x: (B, T, D_IN) f32; p: dict of weights.  Returns (output, new_cache)."""
    # Wrapper-side layout plumbing (free at trace time): flat rows, im2col
    # weight reshape, and one packed buffer for the four tiny param vectors.
    x2 = x.reshape(B * T, D_IN)
    w1r = p["w1"].reshape(K0 * D_IN, D_HID)           # (24, 32)
    w2r = p["w2"].reshape(K1 * D_HID, D_IN)           # (96, 8)
    pv = jnp.zeros((4, D_HID), jnp.float32)
    pv = pv.at[0, :D_HID].set(p["b1"].reshape(-1))
    pv = pv.at[1, :D_IN].set(p["b2"].reshape(-1))
    pv = pv.at[2, :D_IN].set(p["gamma"].reshape(-1))
    pv = pv.at[3, :D_IN].set(p["beta"].reshape(-1))

    out = pl.pallas_call(
        _ffn_kernel,
        out_shape=jax.ShapeDtypeStruct((B * T, D_IN), jnp.float32),
        grid=(1,),                                     # whole batch, one step
        in_specs=[
            pl.BlockSpec((B * T, D_IN), lambda i: (0, 0)),
            pl.BlockSpec((K0 * D_IN, D_HID), lambda i: (0, 0)),
            pl.BlockSpec((K1 * D_HID, D_IN), lambda i: (0, 0)),
            pl.BlockSpec((4, D_HID), lambda i: (0, 0)),
        ],
        out_specs=pl.BlockSpec((B * T, D_IN), lambda i: (0, 0)),
        compiler_params=pltpu.CompilerParams(
            dimension_semantics=("arbitrary",)),
    )(x2, w1r, w2r, pv)
    # TODO(synk): causal/deconline cache branch (new_cache tensor) not
    # implemented; default non-causal forward returns new_cache=None anyway.
    return out.reshape(B, T, D_IN), None


# --------------------------------------------------------------------------
# Pure-JAX reference (same math, no Pallas) for validation
# --------------------------------------------------------------------------
def _ffn_ref(x, p):
    xp = jnp.pad(x, ((0, 0), (PAD0, PAD0), (0, 0)))
    h = sum(jnp.einsum('btc,cd->btd', xp[:, k:k + T, :], p["w1"][k])
            for k in range(K0)) + p["b1"]
    h = jax.nn.relu(h)
    hp = jnp.pad(h, ((0, 0), (PAD1, PAD1), (0, 0)))
    y = sum(jnp.einsum('btc,cd->btd', hp[:, k:k + T, :], p["w2"][k])
            for k in range(K1)) + p["b2"]
    z = y + x
    mu = z.mean(-1, keepdims=True)
    var = jnp.square(z - mu).mean(-1, keepdims=True)
    return (z - mu) / jnp.sqrt(var + LN_EPS) * p["gamma"] + p["beta"]


# --------------------------------------------------------------------------
# Deterministic parameter init (shapes follow w_1 / w_2 / layer_norm)
# --------------------------------------------------------------------------
def init_params(key):
    ks = jax.random.split(key, 6)
    s = 0.1
    return dict(
        w1=jax.random.normal(ks[0], (K0, D_IN, D_HID), jnp.float32) * s,
        b1=jax.random.normal(ks[1], (1, D_HID), jnp.float32) * s,
        w2=jax.random.normal(ks[2], (K1, D_HID, D_IN), jnp.float32) * s,
        b2=jax.random.normal(ks[3], (1, D_IN), jnp.float32) * s,
        gamma=1.0 + jax.random.normal(ks[4], (1, D_IN), jnp.float32) * s,
        beta=jax.random.normal(ks[5], (1, D_IN), jnp.float32) * s,
    )


if __name__ == "__main__":
    key = jax.random.PRNGKey(0)
    k_x, k_p = jax.random.split(key)

    # Module input x is (B, T, d_in) (it transposes internally for the convs),
    # so no layout transposes are needed in the wrapper.
    x = jax.random.normal(k_x, (B, T, D_IN), jnp.float32)
    params = init_params(k_p)

    y, new_cache = positionwise_ffn_pallas(x, params)
    y = jax.block_until_ready(y)

    y_ref = _ffn_ref(x, params)
    assert y.shape == (B, T, D_IN)
    assert new_cache is None
    err = float(jnp.max(jnp.abs(y - y_ref)))
    assert jnp.allclose(y, y_ref, atol=1e-5, rtol=1e-5), (
        "max abs err = %e" % err)

    print("KERNEL_OK")
</pallas_src>

<mosaic_0001>
module attributes {stable_mosaic.version = 11 : i64} {
  func.func @_ffn_kernel(%arg0: i32, %arg1: memref<32x8xf32, #tpu.memory_space<vmem>>, %arg2: memref<24x32xf32, #tpu.memory_space<vmem>>, %arg3: memref<96x8xf32, #tpu.memory_space<vmem>>, %arg4: memref<4x32xf32, #tpu.memory_space<vmem>>, %arg5: memref<32x8xf32, #tpu.memory_space<vmem>>) attributes {dimension_semantics = [#tpu.dimension_semantics<arbitrary>], iteration_bounds = array<i64: 1>, scalar_prefetch = 0 : i64, scratch_operands = 0 : i64, tpu.core_type = #tpu.core_type<tc>, window_params = [{pipeline_mode = #tpu.pipeline_mode<synchronous>, transform_indices = @transform_0, window_bounds = array<i64: 32, 8>}, {pipeline_mode = #tpu.pipeline_mode<synchronous>, transform_indices = @transform_1, window_bounds = array<i64: 24, 32>}, {pipeline_mode = #tpu.pipeline_mode<synchronous>, transform_indices = @transform_2, window_bounds = array<i64: 96, 8>}, {pipeline_mode = #tpu.pipeline_mode<synchronous>, transform_indices = @transform_3, window_bounds = array<i64: 4, 32>}, {pipeline_mode = #tpu.pipeline_mode<synchronous>, transform_indices = @transform_4, window_bounds = array<i64: 32, 8>}]} {
    %c0 = arith.constant 0 : index
    %c0_0 = arith.constant 0 : index
    %0 = vector.load %arg1[%c0, %c0_0] : memref<32x8xf32, #tpu.memory_space<vmem>>, vector<32x8xf32>
    %c0_1 = arith.constant 0 : index
    %c0_2 = arith.constant 0 : index
    %1 = vector.load %arg4[%c0_1, %c0_2] : memref<4x32xf32, #tpu.memory_space<vmem>>, vector<4x32xf32>
    %2 = vector.extract_strided_slice %1 {offsets = [0, 0], sizes = [1, 32], strides = [1, 1]} : vector<4x32xf32> to vector<1x32xf32>
    %3 = vector.extract_strided_slice %1 {offsets = [1, 0], sizes = [1, 8], strides = [1, 1]} : vector<4x32xf32> to vector<1x8xf32>
    %4 = vector.extract_strided_slice %1 {offsets = [2, 0], sizes = [1, 8], strides = [1, 1]} : vector<4x32xf32> to vector<1x8xf32>
    %5 = vector.extract_strided_slice %1 {offsets = [3, 0], sizes = [1, 8], strides = [1, 1]} : vector<4x32xf32> to vector<1x8xf32>
    %6 = tpu.iota {dimensions = array<i32: 0>} : vector<32x1xi32>
    %c16_i32 = arith.constant 16 : i32
    %c0_i32 = arith.constant 0 : i32
    %7 = arith.cmpi eq, %c16_i32, %c0_i32 : i32
    %c1_i32 = arith.constant 1 : i32
    %8 = arith.select %7, %c1_i32, %c16_i32 : i32
    %9 = vector.broadcast %8 : i32 to vector<32x1xi32>
    %10 = arith.remsi %6, %9 : vector<32x1xi32>
    %c0_i32_3 = arith.constant 0 : i32
    %11 = vector.broadcast %c0_i32_3 : i32 to vector<32x1xi32>
    %12 = arith.cmpi ne, %10, %11 : vector<32x1xi32>
    %c0_i32_4 = arith.constant 0 : i32
    %13 = vector.broadcast %c0_i32_4 : i32 to vector<32x1xi32>
    %14 = arith.cmpi slt, %10, %13 : vector<32x1xi32>
    %c0_i32_5 = arith.constant 0 : i32
    %15 = arith.cmpi slt, %8, %c0_i32_5 : i32
    %16 = vector.broadcast %15 : i1 to vector<32x1xi1>
    %17 = vector.broadcast %16 : vector<32x1xi1> to vector<32x1xi1>
    %18 = arith.xori %14, %17 : vector<32x1xi1>
    %19 = arith.andi %18, %12 : vector<32x1xi1>
    %20 = vector.broadcast %8 : i32 to vector<32x1xi32>
    %21 = arith.addi %10, %20 : vector<32x1xi32>
    %22 = arith.select %19, %21, %10 : vector<32x1xi1>, vector<32x1xi32>
    %c0_i32_6 = arith.constant 0 : i32
    %23 = vector.broadcast %c0_i32_6 : i32 to vector<32x1xi32>
    %24 = arith.cmpi eq, %22, %23 : vector<32x1xi32>
    %c15_i32 = arith.constant 15 : i32
    %25 = vector.broadcast %c15_i32 : i32 to vector<32x1xi32>
    %26 = arith.cmpi eq, %22, %25 : vector<32x1xi32>
    %c1_i32_7 = arith.constant 1 : i32
    %27 = tpu.dynamic_rotate %0 by %c1_i32_7 dim 0 : vector<32x8xf32>, i32 -> vector<32x8xf32>
    %cst = arith.constant 0.000000e+00 : f32
    %28 = vector.shape_cast %24 : vector<32x1xi1> to vector<32x1xi1>
    %29 = vector.broadcast %28 : vector<32x1xi1> to vector<32x8xi1>
    %30 = vector.broadcast %cst : f32 to vector<32x8xf32>
    %31 = arith.select %29, %30, %27 : vector<32x8xi1>, vector<32x8xf32>
    %c31_i32 = arith.constant 31 : i32
    %32 = tpu.dynamic_rotate %0 by %c31_i32 dim 0 : vector<32x8xf32>, i32 -> vector<32x8xf32>
    %cst_8 = arith.constant 0.000000e+00 : f32
    %33 = vector.shape_cast %26 : vector<32x1xi1> to vector<32x1xi1>
    %34 = vector.broadcast %33 : vector<32x1xi1> to vector<32x8xi1>
    %35 = vector.broadcast %cst_8 : f32 to vector<32x8xf32>
    %36 = arith.select %34, %35, %32 : vector<32x8xi1>, vector<32x8xf32>
    %37 = tpu.concatenate %31, %0, %36 in 1 : vector<32x8xf32>, vector<32x8xf32>, vector<32x8xf32> -> vector<32x24xf32>
    %c0_9 = arith.constant 0 : index
    %c0_10 = arith.constant 0 : index
    %38 = vector.load %arg2[%c0_9, %c0_10] : memref<24x32xf32, #tpu.memory_space<vmem>>, vector<24x32xf32>
    %cst_11 = arith.constant dense<0.000000e+00> : vector<32x32xf32>
    %39 = tpu.matmul %37, %38, %cst_11 {dimension_numbers = #tpu.dot_dimension_numbers<[1], [0], [0], [1], [0, 0, 1, 1], [], []>} : vector<32x24xf32>, vector<24x32xf32>, vector<32x32xf32> -> vector<32x32xf32>
    %40 = vector.broadcast %2 : vector<1x32xf32> to vector<32x32xf32>
    %41 = arith.addf %39, %40 : vector<32x32xf32>
    %cst_12 = arith.constant 0.000000e+00 : f32
    %42 = vector.broadcast %cst_12 : f32 to vector<32x32xf32>
    %43 = arith.maximumf %41, %42 : vector<32x32xf32>
    %c1_i32_13 = arith.constant 1 : i32
    %44 = tpu.dynamic_rotate %43 by %c1_i32_13 dim 0 : vector<32x32xf32>, i32 -> vector<32x32xf32>
    %cst_14 = arith.constant 0.000000e+00 : f32
    %45 = vector.shape_cast %24 : vector<32x1xi1> to vector<32x1xi1>
    %46 = vector.broadcast %45 : vector<32x1xi1> to vector<32x32xi1>
    %47 = vector.broadcast %cst_14 : f32 to vector<32x32xf32>
    %48 = arith.select %46, %47, %44 : vector<32x32xi1>, vector<32x32xf32>
    %c31_i32_15 = arith.constant 31 : i32
    %49 = tpu.dynamic_rotate %43 by %c31_i32_15 dim 0 : vector<32x32xf32>, i32 -> vector<32x32xf32>
    %cst_16 = arith.constant 0.000000e+00 : f32
    %50 = vector.shape_cast %26 : vector<32x1xi1> to vector<32x1xi1>
    %51 = vector.broadcast %50 : vector<32x1xi1> to vector<32x32xi1>
    %52 = vector.broadcast %cst_16 : f32 to vector<32x32xf32>
    %53 = arith.select %51, %52, %49 : vector<32x32xi1>, vector<32x32xf32>
    %54 = tpu.concatenate %48, %43, %53 in 1 : vector<32x32xf32>, vector<32x32xf32>, vector<32x32xf32> -> vector<32x96xf32>
    %c0_17 = arith.constant 0 : index
    %c0_18 = arith.constant 0 : index
    %55 = vector.load %arg3[%c0_17, %c0_18] : memref<96x8xf32, #tpu.memory_space<vmem>>, vector<96x8xf32>
    %cst_19 = arith.constant dense<0.000000e+00> : vector<32x8xf32>
    %56 = tpu.matmul %54, %55, %cst_19 {dimension_numbers = #tpu.dot_dimension_numbers<[1], [0], [0], [1], [0, 0, 1, 1], [], []>} : vector<32x96xf32>, vector<96x8xf32>, vector<32x8xf32> -> vector<32x8xf32>
    %57 = vector.broadcast %3 : vector<1x8xf32> to vector<32x8xf32>
    %58 = arith.addf %56, %57 : vector<32x8xf32>
    %59 = arith.addf %58, %0 : vector<32x8xf32>
    %cst_20 = arith.constant dense<0.000000e+00> : vector<32xf32>
    %60 = vector.multi_reduction <add>, %59, %cst_20 [1] : vector<32x8xf32> to vector<32xf32>
    %61 = vector.shape_cast %60 : vector<32xf32> to vector<32x1xf32>
    %cst_21 = arith.constant 8.000000e+00 : f32
    %62 = vector.broadcast %cst_21 : f32 to vector<32x1xf32>
    %63 = arith.divf %61, %62 : vector<32x1xf32>
    %64 = vector.broadcast %63 : vector<32x1xf32> to vector<32x8xf32>
    %65 = arith.subf %59, %64 : vector<32x8xf32>
    %66 = arith.mulf %65, %65 : vector<32x8xf32>
    %cst_22 = arith.constant dense<0.000000e+00> : vector<32xf32>
    %67 = vector.multi_reduction <add>, %66, %cst_22 [1] : vector<32x8xf32> to vector<32xf32>
    %68 = vector.shape_cast %67 : vector<32xf32> to vector<32x1xf32>
    %cst_23 = arith.constant 8.000000e+00 : f32
    %69 = vector.broadcast %cst_23 : f32 to vector<32x1xf32>
    %70 = arith.divf %68, %69 : vector<32x1xf32>
    %71 = vector.broadcast %63 : vector<32x1xf32> to vector<32x8xf32>
    %72 = arith.subf %59, %71 : vector<32x8xf32>
    %cst_24 = arith.constant 9.99999974E-6 : f32
    %73 = vector.broadcast %cst_24 : f32 to vector<32x1xf32>
    %74 = arith.addf %70, %73 : vector<32x1xf32>
    %75 = math.rsqrt %74 : vector<32x1xf32>
    %76 = vector.broadcast %75 : vector<32x1xf32> to vector<32x8xf32>
    %77 = arith.mulf %72, %76 : vector<32x8xf32>
    %78 = vector.broadcast %4 : vector<1x8xf32> to vector<32x8xf32>
    %79 = arith.mulf %77, %78 : vector<32x8xf32>
    %80 = vector.broadcast %5 : vector<1x8xf32> to vector<32x8xf32>
    %81 = arith.addf %79, %80 : vector<32x8xf32>
    %c0_25 = arith.constant 0 : index
    %c0_26 = arith.constant 0 : index
    %82 = vector.load %arg5[%c0_25, %c0_26] : memref<32x8xf32, #tpu.memory_space<vmem>>, vector<32x8xf32>
    tpu.vector_store %arg5[%c0_25, %c0_26], %81 {strides = array<i32>} : memref<32x8xf32, #tpu.memory_space<vmem>>, vector<32x8xf32>,
    return
  }
  func.func @transform_0(%arg0: i32) -> (i32, i32) {
    %c0_i32 = arith.constant 0 : i32
    %c0_i32_0 = arith.constant 0 : i32
    %c0_i32_1 = arith.constant 0 : i32
    return %c0_i32, %c0_i32_0 : i32, i32
  }
  func.func @transform_1(%arg0: i32) -> (i32, i32) {
    %c0_i32 = arith.constant 0 : i32
    %c0_i32_0 = arith.constant 0 : i32
    %c0_i32_1 = arith.constant 0 : i32
    return %c0_i32, %c0_i32_0 : i32, i32
  }
  func.func @transform_2(%arg0: i32) -> (i32, i32) {
    %c0_i32 = arith.constant 0 : i32
    %c0_i32_0 = arith.constant 0 : i32
    %c0_i32_1 = arith.constant 0 : i32
    return %c0_i32, %c0_i32_0 : i32, i32
  }
  func.func @transform_3(%arg0: i32) -> (i32, i32) {
    %c0_i32 = arith.constant 0 : i32
    %c0_i32_0 = arith.constant 0 : i32
    %c0_i32_1 = arith.constant 0 : i32
    return %c0_i32, %c0_i32_0 : i32, i32
  }
  func.func @transform_4(%arg0: i32) -> (i32, i32) {
    %c0_i32 = arith.constant 0 : i32
    %c0_i32_0 = arith.constant 0 : i32
    %c0_i32_1 = arith.constant 0 : i32
    return %c0_i32, %c0_i32_0 : i32, i32
  }
}

</mosaic_0001>

<bundles_post_ra>
// kernel: tpu_custom_call.1
= control target key start
LH: loop header
LB: loop body
LE: loop exit
PB: predicated region body
PF: predicated region fallthrough
CT: control target
= control target key end

     0   :  { %v22_v0 = vlaneseq  ;;  %s650_s21 = smov 8   ;;  %s651_s27 = smov 16   ;;  %vm157_vm5 = vcmask 64512   ;;  %vm162_vm6 = vcmask 130048   ;;  %vm174_vm7 = vcmask 195584   ;;  %s893_s0 = inlined_call_operand.vmem [shape: f32[32,8], index: 0, kind: input, shape index: {}]   ;;  %s894_s1 = inlined_call_operand.vmem [shape: f32[24,32], index: 1, kind: input, shape index: {}]   ;;  %s895_s2 = inlined_call_operand.vmem [shape: f32[96,8], index: 2, kind: input, shape index: {}]   ;;  %s896_s3 = inlined_call_operand.vmem [shape: f32[4,32], index: 3, kind: input, shape index: {}]   ;;  %s897_s4 = inlined_call_operand.vmem [shape: f32[32,8], index: 4, kind: output, shape index: {}]  }
   0x1   :  { %v682_v1 = vld [vmem:[%s893_s0 + $0x18] sm:$0xff]  ;;  %v687_v2 = vld [vmem:[%s893_s0] sm:$0xff]  ;;  %v692_v3 = vld [vmem:[%s893_s0 + $0x8] sm:$0xff]  ;;  %vm332_vm9 = vcmask 261120   ;;  %vm337_vm10 = vcmask 523264   ;;  %vm358_vm11 = vcmask 785408  }
   0x2   :  { %135 = vrot.lane.b32.xlu1 %v682_v1, %s650_s21  ;;  %129 = vrot.lane.b32.xlu0 %v687_v2, %s650_s21  ;;  %v696_v4 = vshrl.u32 %v22_v0, 7  ;;  %v701_v5 = vld [vmem:[%s893_s0 + $0x10] sm:$0xff]  ;;  %v104_v6 = vrot.slane %v687_v2, 1  ;;  %v105_v7 = vrot.slane %v692_v3, 1  ;;  %v107_v10 = vrot.slane %v682_v1, 1  ;;  %v167_v12 = vld [vmem:[%s894_s1] sm:$0xff] }
   0x3   :  { %v106_v8 = vrot.slane %v701_v5, 1  ;;  %v168_v13 = vld [vmem:[%s894_s1 + $0x8] sm:$0xff]  ;;  %v169_v23 = vld [vmem:[%s894_s1 + $0x10] sm:$0xff]  ;;  %v86_v26 = vrot.slane %v682_v1, 7  ;;  %v83_v27 = vrot.slane %v687_v2, 7  ;;  %v84_v34 = vrot.slane %v692_v3, 7 }
   0x4   :  { %vm108_vm0 = vcmp.lt.s32.totalorder %v696_v4, 7  ;;  %v24_v9 = vadd.s32 8, %v696_v4  ;;  %v26_v11 = vadd.s32 24, %v696_v4  ;;  %v610_v18 = vpack.c.bf16 %v168_v13, %v167_v12  ;;  %v342_v57 = vld [vmem:[%s895_s2] sm:$0xff]  ;;  %v343_v58 = vld [vmem:[%s895_s2 + $0x8] sm:$0xff]  ;;  %v344_v59 = vld [vmem:[%s895_s2 + $0x10] sm:$0xff] }
   0x5   :  { %v111_v14 = vsel %vm108_vm0, %v104_v6, %v105_v7  ;;  %v110_v16 = vsel %vm108_vm0, %v105_v7, %v106_v8  ;;  %v112_v21 = vsel %vm108_vm0, %v107_v10, %v104_v6  ;;  %v109_v24 = vsel %vm108_vm0, %v106_v8, %v107_v10  ;;  %v345_v61 = vld [vmem:[%s895_s2 + $0x18] sm:$0xff]  ;;  %v346_v63 = vld [vmem:[%s895_s2 + $0x20] sm:$0xff]  ;;  %v347_v0 = vld [vmem:[%s895_s2 + $0x28] sm:$0xff] }
   0x6   :  { %131 = vrot.lane.b32.xlu0 %v692_v3, %s650_s21  ;;  %145 = vrot.lane.b32.xlu1 %v111_v14, %s651_s27  ;;  %v38_v15 = vand.u32 15, %v24_v9  ;;  %v52_v17 = vand.u32 15, %v26_v11  ;;  %v31_v28 = vand.u32 15, %v696_v4  ;;  %vm87_vm3 = vcmp.lt.s32.totalorder %v696_v4, 1  ;;  %v348_v7 = vld [vmem:[%s895_s2 + $0x30] sm:$0xff]  ;;  %v349_v8 = vld [vmem:[%s895_s2 + $0x38] sm:$0xff] }
   0x7   :  { %611 = vmatprep.subr.bf16.mxu0 %v610_v18  ;;  %v91_v30 = vsel %vm87_vm3, %v86_v26, %v83_v27  ;;  %v25_v31 = vadd.s32 16, %v696_v4  ;;  %v85_v37 = vrot.slane %v701_v5, 7  ;;  %v90_v41 = vsel %vm87_vm3, %v83_v27, %v84_v34  ;;  %v350_v10 = vld [vmem:[%s895_s2 + $0x40] sm:$0xff]  ;;  %v351_v11 = vld [vmem:[%s895_s2 + $0x48] sm:$0xff] }
   0x8   :  { %vm721_vm1 = vcmp.eq.s32.totalorder %v38_v15, 15  ;;  %vm725_vm2 = vcmp.eq.s32.totalorder %v52_v17, 15  ;;  %613 = vmatpush3.bf16.msra.mxu0 %v610_v18  ;;  %vm745_vm4 = vcmp.eq.s32.totalorder %v31_v28, 0  ;;  %v614_v60 = vpack.c.bf16 %v343_v58, %v342_v57  ;;  %v814_v14 = vld [vmem:[%s896_s3] sm:$0xf]  ;;  %v353_v17 = vld [vmem:[%s895_s2 + $0x58] sm:$0xff] }
   0x9   :  { %v122_v22 = vsel %vm721_vm1, 0.0, %v110_v16  ;;  %v124_v25 = vsel %vm725_vm2, 0.0, %v112_v21  ;;  %572 = vmatprep.subr.mxu0 %v169_v23  ;;  %v100_v35 = vsel %vm745_vm4, 0.0, %v91_v30  ;;  %v45_v36 = vand.u32 15, %v25_v31  ;;  %v352_v16 = vld [vmem:[%s895_s2 + $0x50] sm:$0xff]  ;;  %s652_s3 = smov 32  }
   0xa   :  { %133 = vrot.lane.b32.xlu0 %v701_v5, %s650_s21  ;;  %147 = vrot.lane.b32.xlu1 %v122_v22, %s651_s27  ;;  %v89_v44 = vsel %vm87_vm3, %v84_v34, %v85_v37  ;;  %v88_v48 = vsel %vm87_vm3, %v85_v37, %v86_v26  ;;  %v618_v62 = vpack.c.bf16 %v345_v61, %v344_v59  ;;  %v172_v12 = vsub.s32 0, %v696_v4  ;;  %s653_s2 = smov 64  }
   0xb   :  { %vm761_vm8 = vcmp.eq.s32.totalorder %v45_v36, 0  ;;  %615 = vmatprep.subr.bf16.mxu1 %v614_v60  ;;  %v622_v6 = vpack.c.bf16 %v347_v0, %v346_v63  ;;  %v626_v9 = vpack.c.bf16 %v349_v8, %v348_v7  ;;  %v630_v13 = vpack.c.bf16 %v351_v11, %v350_v10 }
   0xc   :  { %573 = vmatpush3.msra.mxu0 %v169_v23  ;;  %v102_v49 = vsel %vm761_vm8, 0.0, %v89_v44  ;;  %617 = vmatpush3.bf16.msra.mxu1 %v614_v60  ;;  %v173_v15 = vrot.slane %v814_v14, %v172_v12  ;;  %v634_v18 = vpack.c.bf16 %v353_v17, %v352_v16 }
   0xd   :  { %619 = vmatprep.subr.bf16.mxu1 %v618_v62 }
   0xe   :  { %149 = vrot.lane.b32.xlu0 %v109_v24, %s651_s27  ;;  %151 = vrot.lane.b32.xlu1 %v124_v25, %s651_s27 }
  0x10   :  { %621 = vmatpush3.bf16.msra.mxu1 %v618_v62 }
  0x11   :  { %623 = vmatprep.subr.bf16.mxu1 %v622_v6 }
  0x14   :  { %625 = vmatpush3.bf16.msra.mxu1 %v622_v6 }
  0x15   :  { %627 = vmatprep.subr.bf16.mxu1 %v626_v9 }
  0x18   :  { %629 = vmatpush3.bf16.msra.mxu1 %v626_v9  ;;  %v356_v9 = vsub.s32 1, %v696_v4 }
  0x19   :  { %631 = vmatprep.subr.bf16.mxu1 %v630_v13 }
  0x1a   :  { %v357_v43 = vrot.slane %v814_v14, %v356_v9 }
  0x1c   :  { %633 = vmatpush3.bf16.msra.mxu1 %v630_v13 }
  0x1d   :  { %635 = vmatprep.subr.bf16.mxu1 %v634_v18 }
  0x20   :  { %637 = vmatpush3.bf16.msra.mxu1 %v634_v18 }
  0x74   :  { %v136_v32 = vpop.permute.xlu1 %135  ;;  %v130_v33 = vpop.permute.xlu0 %129 }
  0x75   :  { %v158_v38 = vsel %vm157_vm5, %v100_v35, %v130_v33  ;;  %v161_v51 = vsel %vm157_vm5, %v88_v48, %v136_v32 }
  0x78   :  { %v132_v39 = vpop.permute.xlu0 %131  ;;  %v146_v40 = vpop.permute.xlu1 %145 }
  0x79   :  { %v163_v42 = vsel %vm162_vm6, %v158_v38, %v146_v40  ;;  %v159_v45 = vsel %vm157_vm5, %v90_v41, %v132_v39 }
  0x7a   :  { %574 = vmatprep.mubr.msk.f32.mxu0 %vm174_vm7, %v163_v42 }
  0x7c   :  { %v134_v46 = vpop.permute.xlu0 %133  ;;  %v148_v47 = vpop.permute.xlu1 %147 }
  0x7d   :  { %v164_v50 = vsel %vm162_vm6, %v159_v45, %v148_v47  ;;  %v160_v52 = vsel %vm157_vm5, %v102_v49, %v134_v46 }
  0x7e   :  { %575 = vmatmul.mubr.msk.f32.vlgmr.msra.gmra.mrb[0].mxu0 %vm174_vm7, %v164_v50 }
  0x80   :  { %v150_v53 = vpop.permute.xlu0 %149  ;;  %v152_v54 = vpop.permute.xlu1 %151 }
  0x81   :  { %v165_v55 = vsel %vm162_vm6, %v160_v52, %v150_v53  ;;  %v166_v56 = vsel %vm162_vm6, %v161_v51, %v152_v54 }
  0x82   :  { %577 = vmatprep.mubr.msk.f32.mxu0 %vm174_vm7, %v165_v55 }
  0x83   :  { %578 = vmatmul.mubr.msk.f32.gmra.mrb[2].mxu0 %vm174_vm7, %v166_v56 }
 0x151   :  { %v576_v21 = vpop.f32.mrb[0].mxu0 }
 0x152   :  { %v259_v22 = vadd.f32 %v576_v21, %v173_v15  ;;  %v253_v23 = vpop.f32.mrb[1].mxu0 }
 0x153   :  { %v254_v24 = vadd.f32 %v253_v23, %v173_v15 }
 0x154   :  { %v273_v25 = vmax.f32 %v259_v22, 0.0 }
 0x155   :  { %v272_v26 = vmax.f32 %v254_v24, 0.0 }
 0x156   :  { %v277_v27 = vrot.slane %v273_v25, 7  ;;  %v289_v28 = vrot.slane %v273_v25, 1  ;;  %306 = vrot.lane.b32.xlu1 %v273_v25, %s652_s3  ;;  %v579_v30 = vpop.f32.mrb[2].mxu0 }
 0x157   :  { %v276_v31 = vrot.slane %v272_v26, 7  ;;  %v288_v32 = vrot.slane %v272_v26, 1  ;;  %v269_v33 = vadd.f32 %v579_v30, %v173_v15  ;;  %v263_v34 = vpop.f32.mrb[3].mxu0  ;;  %304 = vrot.lane.b32.xlu0 %v272_v26, %s652_s3 }
 0x158   :  { %v264_v35 = vadd.f32 %v263_v34, %v173_v15 }
 0x159   :  { %v275_v36 = vmax.f32 %v269_v33, 0.0  ;;  %v294_v37 = vsel %vm108_vm0, %v288_v32, %v289_v28  ;;  %v282_v38 = vsel %vm87_vm3, %v276_v31, %v277_v27 }
 0x15a   :  { %v274_v39 = vmax.f32 %v264_v35, 0.0 }
 0x15b   :  { %v279_v40 = vrot.slane %v275_v36, 7  ;;  %v291_v41 = vrot.slane %v275_v36, 1  ;;  %310 = vrot.lane.b32.xlu1 %v275_v36, %s652_s3  ;;  %320 = vrot.lane.b32.xlu0 %v294_v37, %s653_s2 }
 0x15c   :  { %v278_v42 = vrot.slane %v274_v39, 7  ;;  %v290_v44 = vrot.slane %v274_v39, 1 }
 0x15d   :  { %v295_v45 = vsel %vm108_vm0, %v291_v41, %v288_v32  ;;  %v283_v46 = vsel %vm87_vm3, %v279_v40, %v276_v31 }
 0x15e   :  { %v293_v47 = vsel %vm108_vm0, %v289_v28, %v290_v44  ;;  %v292_v48 = vsel %vm108_vm0, %v290_v44, %v291_v41  ;;  %v280_v50 = vsel %vm87_vm3, %v278_v42, %v279_v40  ;;  %v281_v51 = vsel %vm87_vm3, %v277_v27, %v278_v42 }
 0x15f   :  { %308 = vrot.lane.b32.xlu0 %v274_v39, %s652_s3  ;;  %v297_v49 = vsel %vm721_vm1, 0.0, %v293_v47  ;;  %v299_v52 = vsel %vm725_vm2, 0.0, %v295_v45  ;;  %v284_v19 = vsel %vm745_vm4, 0.0, %v283_v46  ;;  %v286_v62 = vsel %vm761_vm8, 0.0, %v281_v51 }
 0x160   :  { %322 = vrot.lane.b32.xlu1 %v297_v49, %s653_s2 }
 0x163   :  { %324 = vrot.lane.b32.xlu0 %v292_v48, %s653_s2 }
 0x164   :  { %326 = vrot.lane.b32.xlu1 %v299_v52, %s653_s2 }
 0x1c8   :  { %v307_v53 = vpop.permute.xlu1 %306 }
 0x1c9   :  { %v305_v54 = vpop.permute.xlu0 %304  ;;  %v334_v20 = vsel %vm332_vm9, %v282_v38, %v307_v53 }
 0x1ca   :  { %v333_v55 = vsel %vm332_vm9, %v284_v19, %v305_v54 }
 0x1cd   :  { %v311_v56 = vpop.permute.xlu1 %310  ;;  %v321_v57 = vpop.permute.xlu0 %320 }
 0x1ce   :  { %v338_v58 = vsel %vm337_vm10, %v333_v55, %v321_v57  ;;  %v336_v0 = vsel %vm332_vm9, %v280_v50, %v311_v56  ;;  %v515_v56 = vsub.s32 2, %v696_v4 }
 0x1cf   :  { %604 = vmatprep.mubr.msk.f32.mxu1 %vm358_vm11, %v338_v58  ;;  %v523_v58 = vsub.s32 3, %v696_v4 }
 0x1d1   :  { %v309_v59 = vpop.permute.xlu0 %308 }
 0x1d2   :  { %v323_v60 = vpop.permute.xlu1 %322  ;;  %v335_v29 = vsel %vm332_vm9, %v286_v62, %v309_v59  ;;  %v524_v62 = vrot.slane %v814_v14, %v523_v58 }
 0x1d3   :  { %v339_v61 = vsel %vm337_vm10, %v334_v20, %v323_v60  ;;  %v516_v20 = vrot.slane %v814_v14, %v515_v56 }
 0x1d4   :  { %605 = vmatmul.mubr.msk.f32.vlgmr.msra.gmra.mrb[0].mxu1 %vm358_vm11, %v339_v61 }
 0x1d5   :  { %v325_v63 = vpop.permute.xlu0 %324 }
 0x1d6   :  { %v340_v6 = vsel %vm337_vm10, %v335_v29, %v325_v63  ;;  %v327_v7 = vpop.permute.xlu1 %326 }
 0x1d7   :  { %v341_v8 = vsel %vm337_vm10, %v336_v0, %v327_v7  ;;  %607 = vmatprep.mubr.msk.f32.mxu1 %vm358_vm11, %v340_v6 }
 0x1d8   :  { %608 = vmatmul.mubr.msk.f32.gmra.mrb[2].mxu1 %vm358_vm11, %v341_v8 }
 0x2a7   :  { %v606_v10 = vpop.f32.mrb[0].mxu1 }
 0x2a8   :  { %v443_v11 = vadd.f32 %v606_v10, %v357_v43  ;;  %v437_v12 = vpop.f32.mrb[1].mxu1 }
 0x2a9   :  { %v438_v13 = vadd.f32 %v437_v12, %v357_v43 }
 0x2aa   :  { %v457_v15 = vadd.f32 %v443_v11, %v692_v3 }
 0x2ab   :  { %v609_v16 = vpop.f32.mrb[2].mxu1  ;;  %v456_v17 = vadd.f32 %v438_v13, %v687_v2 }
 0x2ac   :  { %v447_v18 = vpop.f32.mrb[3].mxu1  ;;  %v463_v21 = vsel %vm157_vm5, %v457_v15, 0.0  ;;  %v453_v22 = vadd.f32 %v609_v16, %v357_v43 }
 0x2ad   :  { %v448_v23 = vadd.f32 %v447_v18, %v357_v43  ;;  %464 = vadd.xlane.f32.xlu1 %v463_v21  ;;  %v460_v24 = vsel %vm157_vm5, %v456_v17, 0.0 }
 0x2ae   :  { %461 = vadd.xlane.f32.xlu0 %v460_v24  ;;  %v459_v27 = vadd.f32 %v453_v22, %v682_v1 }
 0x2af   :  { %v458_v25 = vadd.f32 %v448_v23, %v701_v5 }
 0x2b0   :  { %v469_v3 = vsel %vm157_vm5, %v459_v27, 0.0 }
 0x2b1   :  { %v466_v26 = vsel %vm157_vm5, %v458_v25, 0.0 }
 0x2b2   :  { %467 = vadd.xlane.f32.xlu0 %v466_v26 }
 0x2b6   :  { %470 = vadd.xlane.f32.xlu0 %v469_v3 }
 0x33a   :  { %v465_v2 = vpop.xlane.xlu1 %464 }
 0x33b   :  { %v474_v28 = vmul.f32 0.125, %v465_v2  ;;  %v462_v30 = vpop.xlane.xlu0 %461 }
 0x33c   :  { %v473_v31 = vmul.f32 0.125, %v462_v30 }
 0x33d   :  { %v478_v32 = vsub.f32 %v457_v15, %v474_v28 }
 0x33e   :  { %v477_v33 = vsub.f32 %v456_v17, %v473_v31 }
 0x33f   :  { %v468_v34 = vpop.xlane.xlu0 %467  ;;  %v482_v35 = vmul.f32 %v478_v32, %v478_v32 }
 0x340   :  { %v475_v36 = vmul.f32 0.125, %v468_v34  ;;  %v481_v37 = vmul.f32 %v477_v33, %v477_v33 }
 0x341   :  { %v488_v5 = vsel %vm157_vm5, %v482_v35, 0.0 }
 0x342   :  { %v479_v38 = vsub.f32 %v458_v25, %v475_v36  ;;  %489 = vadd.xlane.f32.xlu0 %v488_v5  ;;  %v485_v1 = vsel %vm157_vm5, %v481_v37, 0.0 }
 0x343   :  { %486 = vadd.xlane.f32.xlu1 %v485_v1  ;;  %v471_v39 = vpop.xlane.xlu0 %470 }
 0x344   :  { %v476_v40 = vmul.f32 0.125, %v471_v39  ;;  %v483_v41 = vmul.f32 %v479_v38, %v479_v38 }
 0x346   :  { %v480_v42 = vsub.f32 %v459_v27, %v476_v40  ;;  %v491_v44 = vsel %vm157_vm5, %v483_v41, 0.0 }
 0x347   :  { %492 = vadd.xlane.f32.xlu1 %v491_v44 }
 0x348   :  { %v484_v45 = vmul.f32 %v480_v42, %v480_v42 }
 0x34a   :  { %v494_v46 = vsel %vm157_vm5, %v484_v45, 0.0 }
 0x34b   :  { %495 = vadd.xlane.f32.xlu0 %v494_v46 }
 0x3cf   :  { %v490_v47 = vpop.xlane.xlu0 %489 }
 0x3d0   :  { %v498_v48 = vmul.f32 0.125, %v490_v47  ;;  %v487_v49 = vpop.xlane.xlu1 %486 }
 0x3d1   :  { %v497_v50 = vmul.f32 0.125, %v487_v49 }
 0x3d2   :  { %v502_v51 = vadd.f32 1e-05, %v498_v48 }
 0x3d3   :  { %v501_v52 = vadd.f32 1e-05, %v497_v50 }
 0x3d4   :  { %642 = vrsqrt.f32 %v502_v51  ;;  %v493_v53 = vpop.xlane.xlu1 %492 }
 0x3d5   :  { %644 = vrsqrt.f32 %v501_v52  ;;  %v499_v54 = vmul.f32 0.125, %v493_v53 }
 0x3d7   :  { %v503_v19 = vadd.f32 1e-05, %v499_v54 }
 0x3d8   :  { %v496_v55 = vpop.xlane.xlu0 %495 }
 0x3d9   :  { %646 = vrsqrt.f32 %v503_v19  ;;  %v500_v57 = vmul.f32 0.125, %v496_v55 }
 0x3db   :  { %v504_v59 = vadd.f32 1e-05, %v500_v57 }
 0x3dd   :  { %648 = vrsqrt.f32 %v504_v59 }
 0x3de   :  { %v643_v60 = vpop.eup %642 }
 0x3df   :  { %v645_v61 = vpop.eup %644  ;;  %v510_v29 = vmul.f32 %v643_v60, %v478_v32 }
 0x3e0   :  { %v509_v63 = vmul.f32 %v645_v61, %v477_v33 }
 0x3e1   :  { %v518_v0 = vmul.f32 %v516_v20, %v510_v29 }
 0x3e2   :  { %v517_v6 = vmul.f32 %v516_v20, %v509_v63 }
 0x3e3   :  { %v647_v7 = vpop.eup %646  ;;  %v526_v8 = vadd.f32 %v524_v62, %v518_v0 }
 0x3e4   :  { %v525_v9 = vadd.f32 %v524_v62, %v517_v6  ;;  %v511_v43 = vmul.f32 %v647_v7, %v479_v38 }
 0x3e5   :  { %530 = vst.msk [vmem:[%s897_s4 + $0x8] sm:$0xff] %vm157_vm5, %v526_v8 }
 0x3e6   :  { %529 = vst.msk [vmem:[%s897_s4] sm:$0xff] %vm157_vm5, %v525_v9  ;;  %v519_v4 = vmul.f32 %v516_v20, %v511_v43 }
 0x3e7   :  { %v649_v14 = vpop.eup %648 }
 0x3e8   :  { %v527_v10 = vadd.f32 %v524_v62, %v519_v4  ;;  %v512_v11 = vmul.f32 %v649_v14, %v480_v42 }
 0x3ea   :  { %531 = vst.msk [vmem:[%s897_s4 + $0x10] sm:$0xff] %vm157_vm5, %v527_v10  ;;  %v520_v12 = vmul.f32 %v516_v20, %v512_v11 }
 0x3ec   :  { %v528_v13 = vadd.f32 %v524_v62, %v520_v12 }
 0x3ee   :  { %532 = vst.msk [vmem:[%s897_s4 + $0x18] sm:$0xff] %vm157_vm5, %v528_v13 }

</bundles_post_ra>
